<compile_context>
chip_gen: v7x
topology: tpu7x:2x2x1
jax: 0.10.0
libtpu: 0.0.40
codegen_flags: <defaults>
</compile_context>

<pallas_src>
import functools
import math

import jax
import jax.numpy as jnp
from jax.experimental import pallas as pl
from jax.experimental.pallas import tpu as pltpu


def _round_up(v, m):
    return -(-v // m) * m


def _acos_f32(x):
    # Long Abramowitz & Stegun 4.4.46 polynomial: acos(x) ~ sqrt(1-x)*P7(x) for
    # x in [0,1], |err| <= 2e-8 rad (negligible after the 2*s/pi output scale).
    # Built from mul/add/sqrt/select which always lower on Mosaic (jnp.arccos
    # has no guaranteed TPU lowering).
    a = jnp.abs(x)
    p = jnp.float32(-0.0012624911)
    for c in (0.0066700901, -0.0170881256, 0.0308918810, -0.0501743046,
              0.0889789874, -0.2145988016, 1.5707963050):
        p = p * a + jnp.float32(c)
    r = jnp.sqrt(jnp.maximum(jnp.float32(1.0) - a, jnp.float32(0.0))) * p
    return jnp.where(x < 0, jnp.float32(math.pi) - r, r)


def _air_margin_kernel(xh_ref, xl_ref, w_ref, o_ref, *, s, eps):
    # xh_ref/xl_ref : (TB, in_f) bf16 hi/lo split of the row-normalized input
    # w_ref         : (TN, in_f) raw f32 weight rows (lane-dense along in_f);
    #                 its block index depends only on the leading grid axis, so
    #                 it stays VMEM-resident across the inner batch sweep.
    w = w_ref[...]

    # Per-class inverse L2 norm, computed on the VMEM tile (no extra HBM pass).
    # One Newton step on rsqrt -> ~f32 accuracy regardless of the HW approx,
    # which matters because d(acos)/dx blows up near |cos| = 1.
    ss = jnp.sum(w * w, axis=1, keepdims=True) + jnp.float32(1e-24)   # (TN, 1)
    y = jax.lax.rsqrt(ss)
    y = y * (jnp.float32(1.5) - jnp.float32(0.5) * ss * y * y)
    wn = w * y                                   # row-normalized weight (sublane bcast)

    # bf16x3 split of the normalized weight (pure VPU work, hidden under the MXU).
    w_hi = wn.astype(jnp.bfloat16)
    w_lo = (wn - w_hi.astype(jnp.float32)).astype(jnp.bfloat16)

    # (TB, K) x (TN, K)^T -> (TB, TN): native transposed-RHS MXU matmul,
    # three bf16 passes with f32 accumulation (~f32-accurate cos).
    dims = (((1,), (1,)), ((), ()))
    xh = xh_ref[...]
    xl = xl_ref[...]
    cos_t = jax.lax.dot_general(xh, w_hi, dims, preferred_element_type=jnp.float32)
    cos_t = cos_t + jax.lax.dot_general(xl, w_hi, dims,
                                        preferred_element_type=jnp.float32)
    cos_t = cos_t + jax.lax.dot_general(xh, w_lo, dims,
                                        preferred_element_type=jnp.float32)

    cos_t = jnp.clip(cos_t, jnp.float32(-1.0 + eps), jnp.float32(1.0 - eps))
    theta = _acos_f32(cos_t)
    # (pi - 2*theta) * (s/pi) == s - (2*s/pi)*theta ; the margin is applied in
    # the wrapper (it only touches B elements).
    o_ref[...] = (jnp.float32(s)
                  - jnp.float32(2.0 * s / math.pi) * theta).astype(o_ref.dtype)


def _working_set_bytes(tb, tn, in_f):
    # Double-buffered tiles: 2 x (xn_hi + xn_lo bf16, weight f32, output f32).
    return 2 * (2 * tb * in_f * 2 + tn * in_f * 4 + tb * tn * 4)


def _pick_tiles(b, out_f, in_f, tile_b, tile_n, budget):
    tb = min(_round_up(tile_b, 16), _round_up(b, 16))
    tn = min(_round_up(tile_n, 128), _round_up(out_f, 128))
    while tn > 128 and _working_set_bytes(tb, tn, in_f) > budget:
        tn -= 128
    while tb > 16 and _working_set_bytes(tb, tn, in_f) > budget:
        tb -= 16
    return tb, tn


def air_margin_product(x, label, weight, *, s=64.0, m=0.4, eps=1e-7,
                       tile_b=256, tile_n=1024, vmem_budget=40 << 20):
    b, in_f = x.shape
    out_f, in_f_w = weight.shape
    assert in_f == in_f_w

    x = jnp.asarray(x, jnp.float32)
    weight = jnp.asarray(weight, jnp.float32)   # no copy / no extra HBM pass if f32
    label = jnp.asarray(label, jnp.int32)

    # F.normalize(input) hoisted out of the kernel; bf16 hi/lo split for the
    # bf16x3 contraction (2 bf16 arrays == same HBM bytes as one f32 array).
    xn = x / jnp.maximum(jnp.linalg.norm(x, axis=1, keepdims=True), 1e-12)
    xn_hi = xn.astype(jnp.bfloat16)
    xn_lo = (xn - xn_hi.astype(jnp.float32)).astype(jnp.bfloat16)

    tb, tn = _pick_tiles(b, out_f, in_f, tile_b, tile_n, vmem_budget)
    b_pad = _round_up(b, tb)
    out_pad = _round_up(out_f, tn)

    if b_pad != b:
        xn_hi = jnp.pad(xn_hi, ((0, b_pad - b), (0, 0)))
        xn_lo = jnp.pad(xn_lo, ((0, b_pad - b), (0, 0)))
    w = weight
    if out_pad != out_f:
        # Costs one extra weight read+write; persist a tile-aligned weight
        # outside the hot path to avoid this for unaligned class counts.
        w = jnp.pad(weight, ((0, out_pad - out_f), (0, 0)))

    # Leading axis = out_features (megacore-sharded, weight columns disjoint on
    # v7x); inner axis = batch, over which the weight block index is constant,
    # so the big weight is streamed from HBM exactly once.
    grid = (out_pad // tn, b_pad // tb)

    vmem_limit = int(min(48 << 20,
                         max(32 << 20, _working_set_bytes(tb, tn, in_f) + (8 << 20))))

    kernel = functools.partial(_air_margin_kernel, s=float(s), eps=float(eps))
    out = pl.pallas_call(
        kernel,
        out_shape=jax.ShapeDtypeStruct((b_pad, out_pad), jnp.float32),
        grid=grid,
        in_specs=[
            pl.BlockSpec((tb, in_f), lambda j, i: (i, 0)),   # xn hi
            pl.BlockSpec((tb, in_f), lambda j, i: (i, 0)),   # xn lo
            pl.BlockSpec((tn, in_f), lambda j, i: (j, 0)),   # weight rows (resident)
        ],
        out_specs=pl.BlockSpec((tb, tn), lambda j, i: (i, j)),
        compiler_params=pltpu.CompilerParams(
            dimension_semantics=("parallel", "arbitrary"),
            vmem_limit_bytes=vmem_limit),
    )(xn_hi, xn_lo, w)

    out = out[:b, :out_f]
    # Additive margin: phi = not_phi - 2m, so the scaled output differs from the
    # no-margin value only at (i, label[i]) by a constant. O(B) scatter-add.
    out = out.at[jnp.arange(b), label].add(jnp.float32(-2.0 * m * s / math.pi))
    return out


def _reference(x, label, weight, s=64.0, m=0.4, eps=1e-7):
    xn = x / jnp.maximum(jnp.linalg.norm(x, axis=1, keepdims=True), 1e-12)
    wn = weight / jnp.maximum(jnp.linalg.norm(weight, axis=1, keepdims=True), 1e-12)
    cos_t = jnp.clip(jnp.dot(xn, wn.T, precision=jax.lax.Precision.HIGHEST),
                     -1.0 + eps, 1.0 - eps)
    t = jnp.arccos(cos_t)
    phi = math.pi - 2.0 * t - 2.0 * m
    not_phi = math.pi - 2.0 * t
    one_hot = jax.nn.one_hot(label, weight.shape[0], dtype=cos_t.dtype)
    return jnp.where(one_hot == 1, phi, not_phi) * (s / math.pi)


def _check(B, IN_F, OUT_F, seed):
    key = jax.random.PRNGKey(seed)
    kx, kw, kl = jax.random.split(key, 3)
    x = jax.random.normal(kx, (B, IN_F), jnp.float32)
    # Deterministic xavier_uniform_ init: U(-b, b), b = sqrt(6/(fan_in+fan_out)).
    bound = math.sqrt(6.0 / (IN_F + OUT_F))
    weight = jax.random.uniform(kw, (OUT_F, IN_F), jnp.float32, -bound, bound)
    label = jax.random.randint(kl, (B,), 0, OUT_F, jnp.int32)

    out = jax.block_until_ready(air_margin_product(x, label, weight))
    ref = _reference(x, label, weight)
    max_err = float(jnp.max(jnp.abs(out - ref)))
    assert out.shape == (B, OUT_F) and out.dtype == jnp.float32
    assert max_err < 5e-3, f"max abs err {max_err} at shape ({B},{IN_F},{OUT_F})"


if __name__ == "__main__":
    _check(8, 32, 256, seed=0)    # tile-aligned path
    _check(5, 48, 200, seed=1)    # ragged batch / class count (padded edge tiles)
    print("KERNEL_OK")
</pallas_src>

<mosaic_0001>
module attributes {stable_mosaic.version = 11 : i64} {
  func.func @_air_margin_kernel(%arg0: i32, %arg1: i32, %arg2: memref<16x32xbf16, #tpu.memory_space<vmem>>, %arg3: memref<16x32xbf16, #tpu.memory_space<vmem>>, %arg4: memref<256x32xf32, #tpu.memory_space<vmem>>, %arg5: memref<16x256xf32, #tpu.memory_space<vmem>>) attributes {dimension_semantics = [#tpu.dimension_semantics<parallel>, #tpu.dimension_semantics<arbitrary>], iteration_bounds = array<i64: 1, 1>, scalar_prefetch = 0 : i64, scratch_operands = 0 : i64, tpu.core_type = #tpu.core_type<tc>, window_params = [{transform_indices = @transform_0, window_bounds = array<i64: 16, 32>}, {transform_indices = @transform_1, window_bounds = array<i64: 16, 32>}, {transform_indices = @transform_2, window_bounds = array<i64: 256, 32>}, {transform_indices = @transform_3, window_bounds = array<i64: 16, 256>}]} {
    %c0 = arith.constant 0 : index
    %c0_0 = arith.constant 0 : index
    %0 = vector.load %arg4[%c0, %c0_0] : memref<256x32xf32, #tpu.memory_space<vmem>>, vector<256x32xf32>
    %1 = arith.mulf %0, %0 : vector<256x32xf32>
    %cst = arith.constant dense<0.000000e+00> : vector<256xf32>
    %2 = vector.multi_reduction <add>, %1, %cst [1] : vector<256x32xf32> to vector<256xf32>
    %3 = vector.shape_cast %2 : vector<256xf32> to vector<256x1xf32>
    %cst_1 = arith.constant 1.000000e-24 : f32
    %4 = vector.broadcast %cst_1 : f32 to vector<256x1xf32>
    %5 = arith.addf %3, %4 : vector<256x1xf32>
    %6 = math.rsqrt %5 : vector<256x1xf32>
    %cst_2 = arith.constant 5.000000e-01 : f32
    %7 = vector.broadcast %cst_2 : f32 to vector<256x1xf32>
    %8 = arith.mulf %7, %5 : vector<256x1xf32>
    %9 = arith.mulf %8, %6 : vector<256x1xf32>
    %10 = arith.mulf %9, %6 : vector<256x1xf32>
    %cst_3 = arith.constant 1.500000e+00 : f32
    %11 = vector.broadcast %cst_3 : f32 to vector<256x1xf32>
    %12 = arith.subf %11, %10 : vector<256x1xf32>
    %13 = arith.mulf %6, %12 : vector<256x1xf32>
    %14 = vector.broadcast %13 : vector<256x1xf32> to vector<256x32xf32>
    %15 = arith.mulf %0, %14 : vector<256x32xf32>
    %16 = arith.truncf %15 : vector<256x32xf32> to vector<256x32xbf16>
    %17 = arith.extf %16 : vector<256x32xbf16> to vector<256x32xf32>
    %18 = arith.subf %15, %17 : vector<256x32xf32>
    %19 = arith.truncf %18 : vector<256x32xf32> to vector<256x32xbf16>
    %c0_4 = arith.constant 0 : index
    %c0_5 = arith.constant 0 : index
    %20 = vector.load %arg2[%c0_4, %c0_5] : memref<16x32xbf16, #tpu.memory_space<vmem>>, vector<16x32xbf16>
    %c0_6 = arith.constant 0 : index
    %c0_7 = arith.constant 0 : index
    %21 = vector.load %arg3[%c0_6, %c0_7] : memref<16x32xbf16, #tpu.memory_space<vmem>>, vector<16x32xbf16>
    %cst_8 = arith.constant dense<0.000000e+00> : vector<16x256xf32>
    %22 = tpu.matmul %20, %16, %cst_8 {dimension_numbers = #tpu.dot_dimension_numbers<[1], [1], [0], [0], [0, 0, 1, 0], [], []>} : vector<16x32xbf16>, vector<256x32xbf16>, vector<16x256xf32> -> vector<16x256xf32>
    %cst_9 = arith.constant dense<0.000000e+00> : vector<16x256xf32>
    %23 = tpu.matmul %21, %16, %cst_9 {dimension_numbers = #tpu.dot_dimension_numbers<[1], [1], [0], [0], [0, 0, 1, 0], [], []>} : vector<16x32xbf16>, vector<256x32xbf16>, vector<16x256xf32> -> vector<16x256xf32>
    %24 = arith.addf %22, %23 : vector<16x256xf32>
    %cst_10 = arith.constant dense<0.000000e+00> : vector<16x256xf32>
    %25 = tpu.matmul %20, %19, %cst_10 {dimension_numbers = #tpu.dot_dimension_numbers<[1], [1], [0], [0], [0, 0, 1, 0], [], []>} : vector<16x32xbf16>, vector<256x32xbf16>, vector<16x256xf32> -> vector<16x256xf32>
    %26 = arith.addf %24, %25 : vector<16x256xf32>
    %cst_11 = arith.constant -0.99999988 : f32
    %cst_12 = arith.constant 0.99999988 : f32
    %27 = vector.broadcast %cst_11 : f32 to vector<16x256xf32>
    %28 = arith.maximumf %27, %26 : vector<16x256xf32>
    %29 = vector.broadcast %cst_12 : f32 to vector<16x256xf32>
    %30 = arith.minimumf %29, %28 : vector<16x256xf32>
    %31 = math.absf %30 : vector<16x256xf32>
    %cst_13 = arith.constant -0.0012624911 : f32
    %32 = vector.broadcast %cst_13 : f32 to vector<16x256xf32>
    %33 = arith.mulf %32, %31 : vector<16x256xf32>
    %cst_14 = arith.constant 6.670090e-03 : f32
    %34 = vector.broadcast %cst_14 : f32 to vector<16x256xf32>
    %35 = arith.addf %33, %34 : vector<16x256xf32>
    %36 = arith.mulf %35, %31 : vector<16x256xf32>
    %cst_15 = arith.constant -0.0170881264 : f32
    %37 = vector.broadcast %cst_15 : f32 to vector<16x256xf32>
    %38 = arith.addf %36, %37 : vector<16x256xf32>
    %39 = arith.mulf %38, %31 : vector<16x256xf32>
    %cst_16 = arith.constant 0.0308918804 : f32
    %40 = vector.broadcast %cst_16 : f32 to vector<16x256xf32>
    %41 = arith.addf %39, %40 : vector<16x256xf32>
    %42 = arith.mulf %41, %31 : vector<16x256xf32>
    %cst_17 = arith.constant -0.0501743034 : f32
    %43 = vector.broadcast %cst_17 : f32 to vector<16x256xf32>
    %44 = arith.addf %42, %43 : vector<16x256xf32>
    %45 = arith.mulf %44, %31 : vector<16x256xf32>
    %cst_18 = arith.constant 0.0889789909 : f32
    %46 = vector.broadcast %cst_18 : f32 to vector<16x256xf32>
    %47 = arith.addf %45, %46 : vector<16x256xf32>
    %48 = arith.mulf %47, %31 : vector<16x256xf32>
    %cst_19 = arith.constant -0.214598805 : f32
    %49 = vector.broadcast %cst_19 : f32 to vector<16x256xf32>
    %50 = arith.addf %48, %49 : vector<16x256xf32>
    %51 = arith.mulf %50, %31 : vector<16x256xf32>
    %cst_20 = arith.constant 1.57079625 : f32
    %52 = vector.broadcast %cst_20 : f32 to vector<16x256xf32>
    %53 = arith.addf %51, %52 : vector<16x256xf32>
    %cst_21 = arith.constant 1.000000e+00 : f32
    %54 = vector.broadcast %cst_21 : f32 to vector<16x256xf32>
    %55 = arith.subf %54, %31 : vector<16x256xf32>
    %cst_22 = arith.constant 0.000000e+00 : f32
    %56 = vector.broadcast %cst_22 : f32 to vector<16x256xf32>
    %57 = arith.maximumf %55, %56 : vector<16x256xf32>
    %58 = math.sqrt %57 : vector<16x256xf32>
    %59 = arith.mulf %58, %53 : vector<16x256xf32>
    %cst_23 = arith.constant 0.000000e+00 : f32
    %60 = vector.broadcast %cst_23 : f32 to vector<16x256xf32>
    %61 = arith.cmpf olt, %30, %60 : vector<16x256xf32>
    %cst_24 = arith.constant 3.14159274 : f32
    %62 = vector.broadcast %cst_24 : f32 to vector<16x256xf32>
    %63 = arith.subf %62, %59 : vector<16x256xf32>
    %64 = arith.select %61, %63, %59 : vector<16x256xi1>, vector<16x256xf32>
    %cst_25 = arith.constant 40.7436638 : f32
    %65 = vector.broadcast %cst_25 : f32 to vector<16x256xf32>
    %66 = arith.mulf %65, %64 : vector<16x256xf32>
    %cst_26 = arith.constant 6.400000e+01 : f32
    %67 = vector.broadcast %cst_26 : f32 to vector<16x256xf32>
    %68 = arith.subf %67, %66 : vector<16x256xf32>
    %c0_27 = arith.constant 0 : index
    %c0_28 = arith.constant 0 : index
    %69 = vector.load %arg5[%c0_27, %c0_28] : memref<16x256xf32, #tpu.memory_space<vmem>>, vector<16x256xf32>
    tpu.vector_store %arg5[%c0_27, %c0_28], %68 {strides = array<i32>} : memref<16x256xf32, #tpu.memory_space<vmem>>, vector<16x256xf32>,
    return
  }
  func.func @transform_0(%arg0: i32, %arg1: i32) -> (i32, i32) {
    %c0_i32 = arith.constant 0 : i32
    %c0_i32_0 = arith.constant 0 : i32
    return %arg1, %c0_i32 : i32, i32
  }
  func.func @transform_1(%arg0: i32, %arg1: i32) -> (i32, i32) {
    %c0_i32 = arith.constant 0 : i32
    %c0_i32_0 = arith.constant 0 : i32
    return %arg1, %c0_i32 : i32, i32
  }
  func.func @transform_2(%arg0: i32, %arg1: i32) -> (i32, i32) {
    %c0_i32 = arith.constant 0 : i32
    %c0_i32_0 = arith.constant 0 : i32
    return %arg0, %c0_i32 : i32, i32
  }
  func.func @transform_3(%arg0: i32, %arg1: i32) -> (i32, i32) {
    %c0_i32 = arith.constant 0 : i32
    return %arg1, %arg0 : i32, i32
  }
}

</mosaic_0001>

<bundles_post_ra>
// kernel: tpu_custom_call.1
= control target key start
LH: loop header
LB: loop body
LE: loop exit
PB: predicated region body
PF: predicated region fallthrough
CT: control target
= control target key end

     0   :  { %vm80_vm0 = vcmask 261120   ;;  %s1848_s0 = inlined_call_operand.vmem [shape: bf16[16,32], index: 0, kind: input, shape index: {}]   ;;  %s1849_s1 = inlined_call_operand.vmem [shape: bf16[16,32], index: 1, kind: input, shape index: {}]   ;;  %s1850_s2 = inlined_call_operand.vmem [shape: f32[256,32], index: 2, kind: input, shape index: {}]   ;;  %s1851_s3 = inlined_call_operand.hbm [shape: f32[16,256], index: 3, kind: output, shape index: {}]  }
   0x1   :  { %v1148_v0 = vld [vmem:[%s1850_s2 + $0x80] sm:$0xff]  ;;  %v1158_v2 = vld [vmem:[%s1850_s2 + $0x88] sm:$0xff]  ;;  %v1176_v8 = vld [vmem:[%s1850_s2 + $0x18] sm:$0xff] }
   0x2   :  { %v1153_v1 = vld [vmem:[%s1850_s2] sm:$0xff]  ;;  %v64_v3 = vmul.f32 %v1148_v0, %v1148_v0  ;;  %v65_v5 = vmul.f32 %v1158_v2, %v1158_v2  ;;  %v1169_v6 = vld [vmem:[%s1850_s2 + $0x8] sm:$0xff]  ;;  %v1181_v9 = vld [vmem:[%s1850_s2 + $0x10] sm:$0xff]  ;;  %v51_v14 = vmul.f32 %v1176_v8, %v1176_v8 }
   0x3   :  { %v48_v4 = vmul.f32 %v1153_v1, %v1153_v1  ;;  %v49_v7 = vmul.f32 %v1169_v6, %v1169_v6  ;;  %v50_v15 = vmul.f32 %v1181_v9, %v1181_v9  ;;  %v1194_v16 = vld [vmem:[%s1850_s2 + $0x98] sm:$0xff]  ;;  %v1199_v17 = vld [vmem:[%s1850_s2 + $0x90] sm:$0xff]  ;;  %v1210_v22 = vld [vmem:[%s1850_s2 + $0x28] sm:$0xff] }
   0x4   :  { %v129_v10 = vsel %vm80_vm0, %v64_v3, 0.0  ;;  %v132_v12 = vsel %vm80_vm0, %v65_v5, 0.0  ;;  %v90_v18 = vsel %vm80_vm0, %v51_v14, 0.0  ;;  %v67_v20 = vmul.f32 %v1194_v16, %v1194_v16  ;;  %v1215_v23 = vld [vmem:[%s1850_s2 + $0x20] sm:$0xff] }
   0x5   :  { %v81_v11 = vsel %vm80_vm0, %v48_v4, 0.0  ;;  %130 = vadd.xlane.f32.xlu1 %v129_v10  ;;  %v84_v13 = vsel %vm80_vm0, %v49_v7, 0.0  ;;  %v87_v19 = vsel %vm80_vm0, %v50_v15, 0.0  ;;  %v66_v21 = vmul.f32 %v1199_v17, %v1199_v17 }
   0x6   :  { %82 = vadd.xlane.f32.xlu0 %v81_v11  ;;  %v138_v24 = vsel %vm80_vm0, %v67_v20, 0.0  ;;  %v53_v26 = vmul.f32 %v1210_v22, %v1210_v22  ;;  %v52_v27 = vmul.f32 %v1215_v23, %v1215_v23 }
   0x7   :  { %v135_v25 = vsel %vm80_vm0, %v66_v21, 0.0 }
   0x9   :  { %133 = vadd.xlane.f32.xlu1 %v132_v12 }
   0xa   :  { %85 = vadd.xlane.f32.xlu0 %v84_v13 }
   0xd   :  { %91 = vadd.xlane.f32.xlu1 %v90_v18 }
   0xe   :  { %88 = vadd.xlane.f32.xlu0 %v87_v19 }
   0xf   :  { %8 = vsyncpa [#allocation3], 0  ;;  %v1226_v28 = vld [vmem:[%s1850_s2 + $0xa8] sm:$0xff]  ;;  %v1231_v29 = vld [vmem:[%s1850_s2 + $0xa0] sm:$0xff]  ;;  %v96_v30 = vsel %vm80_vm0, %v53_v26, 0.0  ;;  %v93_v31 = vsel %vm80_vm0, %v52_v27, 0.0 }
  0x10   :  { %v69_v32 = vmul.f32 %v1226_v28, %v1226_v28  ;;  %v68_v33 = vmul.f32 %v1231_v29, %v1231_v29  ;;  %v1242_v34 = vld [vmem:[%s1850_s2 + $0x38] sm:$0xff]  ;;  %v1247_v35 = vld [vmem:[%s1850_s2 + $0x30] sm:$0xff]  ;;  %v1274_v46 = vld [vmem:[%s1850_s2 + $0x48] sm:$0xff] }
  0x11   :  { %139 = vadd.xlane.f32.xlu1 %v138_v24  ;;  %v55_v38 = vmul.f32 %v1242_v34, %v1242_v34  ;;  %v54_v39 = vmul.f32 %v1247_v35, %v1247_v35  ;;  %v1258_v40 = vld [vmem:[%s1850_s2 + $0xb8] sm:$0xff]  ;;  %v1263_v41 = vld [vmem:[%s1850_s2 + $0xb0] sm:$0xff]  ;;  %v1279_v47 = vld [vmem:[%s1850_s2 + $0x40] sm:$0xff]  ;;  %v57_v50 = vmul.f32 %v1274_v46, %v1274_v46 }
  0x12   :  { %136 = vadd.xlane.f32.xlu0 %v135_v25  ;;  %v144_v36 = vsel %vm80_vm0, %v69_v32, 0.0  ;;  %v141_v37 = vsel %vm80_vm0, %v68_v33, 0.0  ;;  %v71_v44 = vmul.f32 %v1258_v40, %v1258_v40  ;;  %v70_v45 = vmul.f32 %v1263_v41, %v1263_v41  ;;  %v1290_v52 = vld [vmem:[%s1850_s2 + $0xc8] sm:$0xff]  ;;  %v1295_v53 = vld [vmem:[%s1850_s2 + $0xc0] sm:$0xff]  ;;  %v1306_v58 = vld [vmem:[%s1850_s2 + $0x58] sm:$0xff] }
  0x13   :  { %v102_v42 = vsel %vm80_vm0, %v55_v38, 0.0  ;;  %v99_v43 = vsel %vm80_vm0, %v54_v39, 0.0  ;;  %v56_v51 = vmul.f32 %v1279_v47, %v1279_v47  ;;  %v108_v54 = vsel %vm80_vm0, %v57_v50, 0.0  ;;  %v1311_v59 = vld [vmem:[%s1850_s2 + $0x50] sm:$0xff]  ;;  %v1322_v3 = vld [vmem:[%s1850_s2 + $0xd8] sm:$0xff]  ;;  %v1338_v12 = vld [vmem:[%s1850_s2 + $0x68] sm:$0xff] }
  0x14   :  { %v150_v48 = vsel %vm80_vm0, %v71_v44, 0.0  ;;  %v147_v49 = vsel %vm80_vm0, %v70_v45, 0.0  ;;  %v73_v56 = vmul.f32 %v1290_v52, %v1290_v52  ;;  %v72_v57 = vmul.f32 %v1295_v53, %v1295_v53  ;;  %v1327_v4 = vld [vmem:[%s1850_s2 + $0xd0] sm:$0xff]  ;;  %v1343_v13 = vld [vmem:[%s1850_s2 + $0x60] sm:$0xff]  ;;  %v1354_v20 = vld [vmem:[%s1850_s2 + $0xe8] sm:$0xff] }
  0x15   :  { %97 = vadd.xlane.f32.xlu1 %v96_v30  ;;  %v105_v55 = vsel %vm80_vm0, %v56_v51, 0.0  ;;  %v59_v62 = vmul.f32 %v1306_v58, %v1306_v58  ;;  %v58_v63 = vmul.f32 %v1311_v59, %v1311_v59  ;;  %v75_v10 = vmul.f32 %v1322_v3, %v1322_v3  ;;  %v1359_v21 = vld [vmem:[%s1850_s2 + $0xe0] sm:$0xff]  ;;  %v1370_v30 = vld [vmem:[%s1850_s2 + $0x78] sm:$0xff]  ;;  %v1391_v39 = vld [vmem:[%s1850_s2 + $0xf0] sm:$0xff] }
  0x16   :  { %94 = vadd.xlane.f32.xlu0 %v93_v31  ;;  %v156_v60 = vsel %vm80_vm0, %v73_v56, 0.0  ;;  %v153_v61 = vsel %vm80_vm0, %v72_v57, 0.0  ;;  %v74_v11 = vmul.f32 %v1327_v4, %v1327_v4  ;;  %v61_v18 = vmul.f32 %v1338_v12, %v1338_v12  ;;  %1865 = vst [vmem:[#allocation5_spill] sm:$0xff] %v1370_v30  ;;  %v1375_v31 = vld [vmem:[%s1850_s2 + $0x70] sm:$0xff]  ;;  %v1386_v38 = vld [vmem:[%s1850_s2 + $0xf8] sm:$0xff]  ;;  %1868 = vst [vmem:[#allocation8_spill] sm:$0xff] %v1391_v39 }
  0x17   :  { %v114_v5 = vsel %vm80_vm0, %v59_v62, 0.0  ;;  %v111_v7 = vsel %vm80_vm0, %v58_v63, 0.0  ;;  %v162_v14 = vsel %vm80_vm0, %v75_v10, 0.0  ;;  %v60_v19 = vmul.f32 %v1343_v13, %v1343_v13  ;;  %1866 = vst [vmem:[#allocation6_spill] sm:$0xff] %v1375_v31  ;;  %1867 = vst [vmem:[#allocation7_spill] sm:$0xff] %v1386_v38  ;;  %v1404_v50 = vld [vmem:[%s1848_s0] sm:$0xff]  }
  0x18   :  { %v159_v15 = vsel %vm80_vm0, %v74_v11, 0.0  ;;  %v120_v24 = vsel %vm80_vm0, %v61_v18, 0.0  ;;  %v77_v26 = vmul.f32 %v1354_v20, %v1354_v20  ;;  %v76_v27 = vmul.f32 %v1359_v21, %v1359_v21  ;;  %1869 = vst [vmem:[#allocation9_spill] sm:$0xff] %v1404_v50  ;;  %969 = vmatprep.mubr.msk.bf16.mxu0 %vm80_vm0, %v1404_v50 }
  0x19   :  { %145 = vadd.xlane.f32.xlu1 %v144_v36  ;;  %v117_v25 = vsel %vm80_vm0, %v60_v19, 0.0  ;;  %v63_v36 = vmul.f32 %v1370_v30, %v1370_v30  ;;  %v79_v44 = vmul.f32 %v1386_v38, %v1386_v38  ;;  %v78_v45 = vmul.f32 %v1391_v39, %v1391_v39 }
  0x1a   :  { %142 = vadd.xlane.f32.xlu0 %v141_v37  ;;  %v168_v32 = vsel %vm80_vm0, %v77_v26, 0.0  ;;  %v165_v33 = vsel %vm80_vm0, %v76_v27, 0.0  ;;  %v62_v37 = vmul.f32 %v1375_v31, %v1375_v31 }
  0x1d   :  { %103 = vadd.xlane.f32.xlu1 %v102_v42  ;;  %v126_v42 = vsel %vm80_vm0, %v63_v36, 0.0 }
  0x1e   :  { %100 = vadd.xlane.f32.xlu0 %v99_v43  ;;  %v123_v43 = vsel %vm80_vm0, %v62_v37, 0.0 }
  0x21   :  { %151 = vadd.xlane.f32.xlu1 %v150_v48  ;;  %v174_v48 = vsel %vm80_vm0, %v79_v44, 0.0 }
  0x22   :  { %148 = vadd.xlane.f32.xlu0 %v147_v49  ;;  %v171_v49 = vsel %vm80_vm0, %v78_v45, 0.0 }
  0x25   :  { %109 = vadd.xlane.f32.xlu1 %v108_v54 }
  0x26   :  { %106 = vadd.xlane.f32.xlu0 %v105_v55 }
  0x29   :  { %157 = vadd.xlane.f32.xlu1 %v156_v60 }
  0x2a   :  { %154 = vadd.xlane.f32.xlu0 %v153_v61 }
  0x2d   :  { %115 = vadd.xlane.f32.xlu1 %v114_v5 }
  0x2e   :  { %112 = vadd.xlane.f32.xlu0 %v111_v7 }
  0x31   :  { %163 = vadd.xlane.f32.xlu1 %v162_v14 }
  0x32   :  { %160 = vadd.xlane.f32.xlu0 %v159_v15 }
  0x35   :  { %121 = vadd.xlane.f32.xlu1 %v120_v24 }
  0x36   :  { %118 = vadd.xlane.f32.xlu0 %v117_v25 }
  0x39   :  { %169 = vadd.xlane.f32.xlu1 %v168_v32 }
  0x3a   :  { %166 = vadd.xlane.f32.xlu0 %v165_v33 }
  0x3d   :  { %127 = vadd.xlane.f32.xlu1 %v126_v42 }
  0x3e   :  { %124 = vadd.xlane.f32.xlu0 %v123_v43 }
  0x41   :  { %175 = vadd.xlane.f32.xlu1 %v174_v48 }
  0x42   :  { %172 = vadd.xlane.f32.xlu0 %v171_v49 }
  0x92   :  { %v131_v51 = vpop.xlane.xlu1 %130 }
  0x93   :  { %v83_v54 = vpop.xlane.xlu0 %82  ;;  %v193_v55 = vadd.f32 1e-24, %v131_v51 }
  0x94   :  { %v177_v56 = vadd.f32 1e-24, %v83_v54 }
  0x95   :  { %1026 = vrsqrt.f32 %v193_v55  ;;  %v257_v11 = vmul.f32 0.5, %v193_v55 }
  0x96   :  { %1028 = vrsqrt.f32 %v177_v56  ;;  %v134_v57 = vpop.xlane.xlu1 %133  ;;  %v241_v19 = vmul.f32 0.5, %v177_v56 }
  0x97   :  { %v86_v60 = vpop.xlane.xlu0 %85  ;;  %v194_v61 = vadd.f32 1e-24, %v134_v57 }
  0x98   :  { %v178_v62 = vadd.f32 1e-24, %v86_v60 }
  0x99   :  { %1030 = vrsqrt.f32 %v194_v61  ;;  %v258_v36 = vmul.f32 0.5, %v194_v61 }
  0x9a   :  { %1032 = vrsqrt.f32 %v178_v62  ;;  %v92_v63 = vpop.xlane.xlu1 %91  ;;  %v242_v45 = vmul.f32 0.5, %v178_v62 }
  0x9b   :  { %v89_v5 = vpop.xlane.xlu0 %88  ;;  %v180_v7 = vadd.f32 1e-24, %v92_v63 }
  0x9c   :  { %v179_v10 = vadd.f32 1e-24, %v89_v5 }
  0x9d   :  { %1034 = vrsqrt.f32 %v180_v7  ;;  %v244_v57 = vmul.f32 0.5, %v180_v7 }
  0x9e   :  { %1036 = vrsqrt.f32 %v179_v10  ;;  %v140_v14 = vpop.xlane.xlu1 %139  ;;  %v243_v5 = vmul.f32 0.5, %v179_v10 }
  0x9f   :  { %v137_v15 = vpop.xlane.xlu0 %136  ;;  %v1027_v18 = vpop.eup %1026  ;;  %v196_v24 = vadd.f32 1e-24, %v140_v14 }
  0xa0   :  { %v195_v25 = vadd.f32 1e-24, %v137_v15  ;;  %v1029_v26 = vpop.eup %1028  ;;  %v289_v27 = vmul.f32 %v1027_v18, %v257_v11 }
  0xa1   :  { %v273_v32 = vmul.f32 %v1029_v26, %v241_v19  ;;  %1038 = vrsqrt.f32 %v196_v24  ;;  %v260_v19 = vmul.f32 0.5, %v196_v24 }
  0xa2   :  { %v321_v33 = vmul.f32 %v1027_v18, %v289_v27  ;;  %1040 = vrsqrt.f32 %v195_v25  ;;  %v98_v37 = vpop.xlane.xlu1 %97 }
  0xa3   :  { %v95_v42 = vpop.xlane.xlu0 %94  ;;  %v1031_v43 = vpop.eup %1030  ;;  %v305_v44 = vmul.f32 %v1029_v26, %v273_v32  ;;  %v182_v48 = vadd.f32 1e-24, %v98_v37 }
  0xa4   :  { %v181_v49 = vadd.f32 1e-24, %v95_v42  ;;  %v1033_v51 = vpop.eup %1032  ;;  %v353_v54 = vsub.f32 1.5, %v321_v33  ;;  %v290_v55 = vmul.f32 %v1031_v43, %v258_v36  ;;  %v259_v36 = vmul.f32 0.5, %v195_v25 }
  0xa5   :  { %v274_v56 = vmul.f32 %v1033_v51, %v242_v45  ;;  %1042 = vrsqrt.f32 %v182_v48  ;;  %v337_v60 = vsub.f32 1.5, %v305_v44  ;;  %v246_v44 = vmul.f32 0.5, %v182_v48 }
  0xa6   :  { %v322_v63 = vmul.f32 %v1031_v43, %v290_v55  ;;  %1044 = vrsqrt.f32 %v181_v49  ;;  %v146_v11 = vpop.xlane.xlu1 %145  ;;  %v385_v37 = vmul.f32 %v1027_v18, %v353_v54 }
  0xa7   :  { %v143_v61 = vpop.xlane.xlu0 %142  ;;  %v1035_v14 = vpop.eup %1034  ;;  %v306_v15 = vmul.f32 %v1033_v51, %v274_v56  ;;  %v198_v27 = vadd.f32 1e-24, %v146_v11  ;;  %v369_v56 = vmul.f32 %v1029_v26, %v337_v60 }
  0xa8   :  { %v197_v32 = vadd.f32 1e-24, %v143_v61  ;;  %v1408_v62 = vpop.eup %1036  ;;  %v354_v42 = vsub.f32 1.5, %v322_v63  ;;  %v276_v33 = vmul.f32 %v1035_v14, %v244_v57  ;;  %v245_v61 = vmul.f32 0.5, %v181_v49 }
  0xa9   :  { %v338_v45 = vsub.f32 1.5, %v306_v15  ;;  %v275_v7 = vmul.f32 %v1408_v62, %v243_v5  ;;  %1046 = vrsqrt.f32 %v198_v27  ;;  %v1413_v25 = vmul.f32 %v385_v37, %v1148_v0 }
  0xaa   :  { %v386_v10 = vmul.f32 %v1031_v43, %v354_v42  ;;  %v308_v55 = vmul.f32 %v1035_v14, %v276_v33  ;;  %1048 = vrsqrt.f32 %v197_v32  ;;  %v104_v50 = vpop.xlane.xlu1 %103  ;;  %v262_v5 = vmul.f32 0.5, %v198_v27 }
  0xab   :  { %v101_v30 = vpop.xlane.xlu0 %100  ;;  %v1039_v24 = vpop.eup %1038  ;;  %v307_v11 = vmul.f32 %v1408_v62, %v275_v7  ;;  %v184_v31 = vadd.f32 1e-24, %v104_v50  ;;  %v370_v43 = vmul.f32 %v1033_v51, %v338_v45  ;;  %v261_v15 = vmul.f32 0.5, %v197_v32 }
  0xac   :  { %v183_v18 = vadd.f32 1e-24, %v101_v30  ;;  %v1041_v54 = vpop.eup %1040  ;;  %v292_v57 = vmul.f32 %v1039_v24, %v260_v19  ;;  %v1416_v48 = vmul.f32 %v386_v10, %v1158_v2  ;;  %v340_v26 = vsub.f32 1.5, %v308_v55 }
  0xad   :  { %v291_v63 = vmul.f32 %v1041_v54, %v259_v36  ;;  %1050 = vrsqrt.f32 %v184_v31  ;;  %v1419_v30 = vmul.f32 %v369_v56, %v1153_v1  ;;  %v339_v19 = vsub.f32 1.5, %v307_v11 }
  0xae   :  { %v324_v60 = vmul.f32 %v1039_v24, %v292_v57  ;;  %1052 = vrsqrt.f32 %v183_v18  ;;  %v152_v42 = vpop.xlane.xlu1 %151  ;;  %v1423_v27 = vpack.c.bf16 %v1416_v48, %v1413_v25  ;;  %v1426_v32 = vmul.f32 %v370_v43, %v1169_v6 }
  0xaf   :  { %v149_v49 = vpop.xlane.xlu0 %148  ;;  %1870 = vst [vmem:[#allocation10_spill] sm:$0xff] %v1419_v30  ;;  %v1043_v50 = vpop.eup %1042  ;;  %v323_v0 = vmul.f32 %v1041_v54, %v291_v63  ;;  %v200_v37 = vadd.f32 1e-24, %v152_v42  ;;  %v248_v10 = vmul.f32 0.5, %v184_v31  ;;  %v372_v1 = vmul.f32 %v1035_v14, %v340_v26  ;;  %v1439_v14 = vld [vmem:[%s1849_s1] sm:$0xff]   ;;  %s1122_s1 = smov [#allocation2]  }
  0xb0   :  { %v199_v33 = vadd.f32 1e-24, %v149_v49  ;;  %v1045_v2 = vpop.eup %1044  ;;  %v356_v7 = vsub.f32 1.5, %v324_v60  ;;  %v278_v51 = vmul.f32 %v1043_v50, %v246_v44  ;;  %1871 = vst [vmem:[#allocation11_spill] sm:$0xff] %v1426_v32  ;;  %v247_v56 = vmul.f32 0.5, %v183_v18  ;;  %997 = vmatprep.subr.msk.bf16.mxu1 %vm80_vm0, %v1423_v27  ;;  %1005 = vmatprep.subr.msk.bf16.mxu0 %vm80_vm0, %v1423_v27  ;;  %1872 = vst [vmem:[#allocation12_spill] sm:$0xff] %v1439_v14 }
  0xb1   :  { %v355_v36 = vsub.f32 1.5, %v323_v0  ;;  %v277_v45 = vmul.f32 %v1045_v2, %v245_v61  ;;  %1054 = vrsqrt.f32 %v200_v37  ;;  %v1434_v61 = vpack.c.bf16 %v1426_v32, %v1419_v30  ;;  %951 = vmatprep.mubr.msk.bf16.mxu1 %vm80_vm0, %v1439_v14  ;;  %s915_s24 = sshll.u32 %s1122_s1, 4  ;;  %s916_s24 = int_to_ptr.vmem [resolvable:$true] %s915_s24 }
  0xb2   :  { %v310_v55 = vmul.f32 %v1043_v50, %v278_v51  ;;  %1056 = vrsqrt.f32 %v199_v33  ;;  %v110_v44 = vpop.xlane.xlu1 %109  ;;  %v388_v63 = vmul.f32 %v1039_v24, %v356_v7  ;;  %v371_v49 = vmul.f32 %v1408_v62, %v339_v19  ;;  %s1098_s25 = scalar_lea.vmem %s916_s24, 512  ;;  %p1103_p1 = scmp.lt.s32.totalorder %s916_s24, %s916_s24 }
  0xb3   :  { %v107_v11 = vpop.xlane.xlu0 %106  ;;  %v1047_v57 = vpop.eup %1046  ;;  %v309_v6 = vmul.f32 %v1045_v2, %v277_v45  ;;  %v186_v31 = vadd.f32 1e-24, %v110_v44  ;;  %v387_v43 = vmul.f32 %v1041_v54, %v355_v36  ;;  %v542_v24 = vsel %vm80_vm0, %v1434_v61, 0  ;;  %p1099_p0 = scmp.ne.s32.totalorder %s916_s24, %s1098_s25  ;;  %p1104_p2 = scmp.lt.s32.totalorder %s1098_s25, %s1098_s25 }
  0xb4   :  { %v1049_v18 = vpop.eup %1048  ;;  %v342_v26 = vsub.f32 1.5, %v310_v55  ;;  %v294_v60 = vmul.f32 %v1047_v57, %v262_v5  ;;  %v185_v42 = vadd.f32 1e-24, %v107_v11  ;;  %v264_v45 = vmul.f32 0.5, %v200_v37  ;;  %936 = vmatpush3.bf16.xpose.msra.mxu1 %v542_v24  ;;  %954 = vmatpush3.bf16.xpose.msra.mxu0 %v542_v24 }
  0xb5   :  { %v293_v0 = vmul.f32 %v1049_v18, %v261_v15  ;;  %1058 = vrsqrt.f32 %v186_v31  ;;  %v341_v7 = vsub.f32 1.5, %v309_v6  ;;  %v263_v44 = vmul.f32 0.5, %v199_v33  ;;  %p1105_p3 = por %p1104_p2, %p1103_p1 }
  0xb6   :  { %v326_v51 = vmul.f32 %v1047_v57, %v294_v60  ;;  %1060 = vrsqrt.f32 %v185_v42  ;;  %v158_v54 = vpop.xlane.xlu1 %157  ;;  %v1447_v15 = vmul.f32 %v388_v63, %v1194_v16  ;;  %v1449_v11 = vmul.f32 %v1043_v50, %v342_v26 }
  0xb7   :  { %v155_v36 = vpop.xlane.xlu0 %154  ;;  %v1051_v5 = vpop.eup %1050  ;;  %v325_v55 = vmul.f32 %v1049_v18, %v293_v0  ;;  %v202_v62 = vadd.f32 1e-24, %v158_v54  ;;  %v1452_v6 = vmul.f32 %v387_v43, %v1199_v17  ;;  %v373_v38 = vmul.f32 %v1045_v2, %v341_v7  ;;  %p1106_p4 = pnand %p1105_p3, %p1099_p0 }
  0xb8   :  { %1873 = vst [vmem:[#allocation13_spill] sm:$0xff] %v1447_v15  ;;  %v1053_v19 = vpop.eup %1052  ;;  %v280_v39 = vmul.f32 %v1051_v5, %v248_v10  ;;  %v201_v14 = vadd.f32 1e-24, %v155_v36  ;;  %v358_v37 = vsub.f32 1.5, %v326_v51  ;;  %v250_v0 = vmul.f32 0.5, %v186_v31 }
  0xb9   :  { %1874 = vst [vmem:[#allocation14_spill] sm:$0xff] %v1452_v6  ;;  %v357_v60 = vsub.f32 1.5, %v325_v55  ;;  %v279_v24 = vmul.f32 %v1053_v19, %v247_v56  ;;  %1062 = vrsqrt.f32 %v202_v62  ;;  %v1456_v50 = vpack.c.bf16 %v1447_v15, %v1452_v6 }
  0xba   :  { %v312_v32 = vmul.f32 %v1051_v5, %v280_v39  ;;  %1064 = vrsqrt.f32 %v201_v14  ;;  %v116_v33 = vpop.xlane.xlu1 %115  ;;  %v1459_v17 = vmul.f32 %v371_v49, %v1181_v9  ;;  %v1462_v2 = vmul.f32 %v372_v1, %v1176_v8 }
  0xbb   :  { %v113_v54 = vpop.xlane.xlu0 %112  ;;  %v1055_v16 = vpop.eup %1054  ;;  %v389_v63 = vmul.f32 %v1049_v18, %v357_v60  ;;  %v311_v30 = vmul.f32 %v1053_v19, %v279_v24  ;;  %v188_v39 = vadd.f32 1e-24, %v116_v33  ;;  %v390_v31 = vmul.f32 %v1047_v57, %v358_v37  ;;  %998 = vmatprep.subr.msk.bf16.mxu1 %vm80_vm0, %v1456_v50  ;;  %1006 = vmatprep.subr.msk.bf16.mxu0 %vm80_vm0, %v1456_v50 }
  0xbc   :  { %v1057_v10 = vpop.eup %1056  ;;  %v344_v43 = vsub.f32 1.5, %v312_v32  ;;  %v296_v56 = vmul.f32 %v1055_v16, %v264_v45  ;;  %v249_v7 = vmul.f32 0.5, %v185_v42  ;;  %v187_v18 = vadd.f32 1e-24, %v113_v54 }
  0xbd   :  { %v295_v26 = vmul.f32 %v1057_v10, %v263_v44  ;;  %v343_v51 = vsub.f32 1.5, %v311_v30  ;;  %v1470_v32 = vpack.c.bf16 %v1462_v2, %v1459_v17  ;;  %1066 = vrsqrt.f32 %v188_v39 }
  0xbe   :  { %v328_v9 = vmul.f32 %v1055_v16, %v296_v56  ;;  %v164_v8 = vpop.xlane.xlu1 %163  ;;  %v266_v45 = vmul.f32 0.5, %v202_v62  ;;  %v265_v42 = vmul.f32 0.5, %v201_v14  ;;  %1068 = vrsqrt.f32 %v187_v18 }
  0xbf   :  { %v161_v1 = vpop.xlane.xlu0 %160  ;;  %v1059_v49 = vpop.eup %1058  ;;  %v327_v57 = vmul.f32 %v1057_v10, %v295_v26  ;;  %v1472_v55 = vmul.f32 %v1051_v5, %v344_v43  ;;  %v545_v30 = vsel %vm80_vm0, %v1470_v32, 0  ;;  %v1477_v37 = vmul.f32 %v389_v63, %v1231_v29 }
  0xc0   :  { %v1061_v36 = vpop.eup %1060  ;;  %v282_v44 = vmul.f32 %v1059_v49, %v250_v0  ;;  %v360_v60 = vsub.f32 1.5, %v328_v9  ;;  %938 = vmatpush3.bf16.xpose.msra.mxu1 %v545_v30  ;;  %956 = vmatpush3.bf16.xpose.msra.mxu0 %v545_v30  ;;  %v204_v33 = vadd.f32 1e-24, %v164_v8  ;;  %v203_v54 = vadd.f32 1e-24, %v161_v1 }
  0xc1   :  { %v281_v24 = vmul.f32 %v1061_v36, %v249_v7  ;;  %v375_v56 = vmul.f32 %v1053_v19, %v343_v51  ;;  %v252_v14 = vmul.f32 0.5, %v188_v39  ;;  %v1480_v26 = vmul.f32 %v390_v31, %v1226_v28 }
  0xc2   :  { %v314_v62 = vmul.f32 %v1059_v49, %v282_v44  ;;  %v122_v5 = vpop.xlane.xlu1 %121  ;;  %v359_v15 = vsub.f32 1.5, %v327_v57  ;;  %1070 = vrsqrt.f32 %v204_v33  ;;  %v1483_v29 = vmul.f32 %v373_v38, %v1215_v23 }
  0xc3   :  { %v119_v0 = vpop.xlane.xlu0 %118  ;;  %v1063_v43 = vpop.eup %1062  ;;  %v313_v6 = vmul.f32 %v1061_v36, %v281_v24  ;;  %v251_v8 = vmul.f32 0.5, %v187_v18  ;;  %1072 = vrsqrt.f32 %v203_v54  ;;  %v392_v19 = vmul.f32 %v1055_v16, %v360_v60 }
  0xc4   :  { %v1065_v63 = vpop.eup %1064  ;;  %v346_v7 = vsub.f32 1.5, %v314_v62  ;;  %v298_v9 = vmul.f32 %v1063_v43, %v266_v45  ;;  %v1487_v28 = vpack.c.bf16 %v1480_v26, %v1477_v37  ;;  %v1491_v39 = vmul.f32 %v1449_v11, %v1210_v22 }
  0xc5   :  { %v297_v51 = vmul.f32 %v1065_v63, %v265_v42  ;;  %v345_v31 = vsub.f32 1.5, %v313_v6  ;;  %v190_v57 = vadd.f32 1e-24, %v122_v5  ;;  %v189_v23 = vadd.f32 1e-24, %v119_v0 }
  0xc6   :  { %v330_v1 = vmul.f32 %v1063_v43, %v298_v9  ;;  %v170_v38 = vpop.xlane.xlu1 %169  ;;  %v391_v30 = vmul.f32 %v1057_v10, %v359_v15  ;;  %999 = vmatprep.subr.msk.bf16.mxu1 %vm80_vm0, %v1487_v28  ;;  %1007 = vmatprep.subr.msk.bf16.mxu0 %vm80_vm0, %v1487_v28  ;;  %v1499_v16 = vpack.c.bf16 %v1491_v39, %v1483_v29  ;;  %v268_v18 = vmul.f32 0.5, %v204_v33 }
  0xc7   :  { %v167_v44 = vpop.xlane.xlu0 %166  ;;  %v329_v45 = vmul.f32 %v1065_v63, %v297_v51  ;;  %v206_v22 = vadd.f32 1e-24, %v170_v38  ;;  %v1067_v11 = vpop.eup %1066  ;;  %v1501_v6 = vmul.f32 %v1059_v49, %v346_v7  ;;  %v267_v42 = vmul.f32 0.5, %v203_v54 }
  0xc8   :  { %1074 = vrsqrt.f32 %v190_v57  ;;  %v1069_v60 = vpop.eup %1068  ;;  %v284_v10 = vmul.f32 %v1067_v11, %v252_v14  ;;  %v548_v24 = vsel %vm80_vm0, %v1499_v16, 0  ;;  %v1505_v62 = vmul.f32 %v1061_v36, %v345_v31 }
  0xc9   :  { %v361_v15 = vsub.f32 1.5, %v329_v45  ;;  %1076 = vrsqrt.f32 %v189_v23  ;;  %v362_v5 = vsub.f32 1.5, %v330_v1  ;;  %v283_v0 = vmul.f32 %v1069_v60, %v251_v8  ;;  %940 = vmatpush3.bf16.xpose.msra.mxu1 %v548_v24  ;;  %958 = vmatpush3.bf16.xpose.msra.mxu0 %v548_v24 }
  0xca   :  { %1078 = vrsqrt.f32 %v206_v22  ;;  %v128_v9 = vpop.xlane.xlu1 %127  ;;  %v316_v7 = vmul.f32 %v1067_v11, %v284_v10  ;;  %v254_v33 = vmul.f32 0.5, %v190_v57  ;;  %v205_v54 = vadd.f32 1e-24, %v167_v44 }
  0xcb   :  { %v125_v49 = vpop.xlane.xlu0 %124  ;;  %v1508_v51 = vmul.f32 %v391_v30, %v1263_v41  ;;  %v315_v14 = vmul.f32 %v1069_v60, %v283_v0  ;;  %v1511_v38 = vmul.f32 %v392_v19, %v1258_v40  ;;  %v1514_v36 = vmul.f32 %v375_v56, %v1247_v35 }
  0xcc   :  { %v1518_v8 = vmul.f32 %v1472_v55, %v1242_v34  ;;  %v1071_v31 = vpop.eup %1070  ;;  %v393_v1 = vmul.f32 %v1065_v63, %v361_v15  ;;  %v253_v45 = vmul.f32 0.5, %v189_v23  ;;  %1080 = vrsqrt.f32 %v205_v54 }
  0xcd   :  { %1875 = vst [vmem:[#allocation15_spill] sm:$0xff] %v1508_v51  ;;  %1876 = vst [vmem:[#allocation16_spill] sm:$0xff] %v1511_v38  ;;  %v192_v57 = vadd.f32 1e-24, %v128_v9  ;;  %v1073_v44 = vpop.eup %1072  ;;  %v394_v10 = vmul.f32 %v1063_v43, %v362_v5  ;;  %v300_v41 = vmul.f32 %v1071_v31, %v268_v18  ;;  %v1522_v30 = vpack.c.bf16 %v1511_v38, %v1508_v51 }
  0xce   :  { %v1526_v35 = vpack.c.bf16 %v1518_v8, %v1514_v36  ;;  %v176_v40 = vpop.xlane.xlu1 %175  ;;  %v348_v34 = vsub.f32 1.5, %v316_v7  ;;  %v299_v55 = vmul.f32 %v1073_v44, %v267_v42  ;;  %v270_v19 = vmul.f32 0.5, %v206_v22 }
  0xcf   :  { %v173_v56 = vpop.xlane.xlu0 %172  ;;  %1082 = vrsqrt.f32 %v192_v57  ;;  %v347_v63 = vsub.f32 1.5, %v315_v14  ;;  %v332_v23 = vmul.f32 %v1071_v31, %v300_v41  ;;  %1000 = vmatprep.subr.msk.bf16.mxu1 %vm80_vm0, %v1522_v30  ;;  %1008 = vmatprep.subr.msk.bf16.mxu0 %vm80_vm0, %v1522_v30  ;;  %v191_v18 = vadd.f32 1e-24, %v125_v49 }
  0xd0   :  { %v551_v43 = vsel %vm80_vm0, %v1526_v35, 0  ;;  %v331_v15 = vmul.f32 %v1073_v44, %v299_v55  ;;  %v208_v24 = vadd.f32 1e-24, %v176_v40  ;;  %v207_v5 = vadd.f32 1e-24, %v173_v56 }
  0xd1   :  { %v1535_v0 = vmul.f32 %v393_v1, %v1295_v53  ;;  %v364_v42 = vsub.f32 1.5, %v332_v23  ;;  %v269_v9 = vmul.f32 0.5, %v205_v54  ;;  %942 = vmatpush3.bf16.xpose.msra.mxu1 %v551_v43  ;;  %960 = vmatpush3.bf16.xpose.msra.mxu0 %v551_v43  ;;  %1084 = vrsqrt.f32 %v191_v18 }
  0xd2   :  { %v1075_v22 = vpop.eup %1074  ;;  %v1538_v7 = vmul.f32 %v394_v10, %v1290_v52  ;;  %v380_v41 = vmul.f32 %v1067_v11, %v348_v34  ;;  %v363_v38 = vsub.f32 1.5, %v331_v15  ;;  %1086 = vrsqrt.f32 %v208_v24 }
  0xd3   :  { %v1077_v14 = vpop.eup %1076  ;;  %v286_v51 = vmul.f32 %v1075_v22, %v254_v33  ;;  %v379_v40 = vmul.f32 %v1069_v60, %v347_v63  ;;  %v396_v56 = vmul.f32 %v1071_v31, %v364_v42  ;;  %1088 = vrsqrt.f32 %v207_v5 }
  0xd4   :  { %v1079_v49 = vpop.eup %1078  ;;  %v285_v55 = vmul.f32 %v1077_v14, %v253_v45  ;;  %v395_v53 = vmul.f32 %v1073_v44, %v363_v38  ;;  %v1542_v54 = vpack.c.bf16 %v1538_v7, %v1535_v0  ;;  %v1546_v52 = vmul.f32 %v1505_v62, %v1279_v47 }
  0xd5   :  { %v318_v1 = vmul.f32 %v1075_v22, %v286_v51  ;;  %v302_v23 = vmul.f32 %v1079_v49, %v270_v19  ;;  %v1550_v11 = vmul.f32 %v1501_v6, %v1274_v46  ;;  %v1553_v60 = vmul.f32 %v396_v56, %v1322_v3 }
  0xd6   :  { %v317_v43 = vmul.f32 %v1077_v14, %v285_v55  ;;  %v1081_v33 = vpop.eup %1080  ;;  %v256_v51 = vmul.f32 0.5, %v192_v57  ;;  %1001 = vmatprep.subr.msk.bf16.mxu1 %vm80_vm0, %v1542_v54  ;;  %1009 = vmatprep.subr.msk.bf16.mxu0 %vm80_vm0, %v1542_v54  ;;  %v1560_v31 = vmul.f32 %v395_v53, %v1327_v4  ;;  %v1571_v44 = vmul.f32 %v379_v40, %v1311_v59 }
  0xd7   :  { %v334_v38 = vmul.f32 %v1079_v49, %v302_v23  ;;  %v350_v47 = vsub.f32 1.5, %v318_v1  ;;  %v301_v45 = vmul.f32 %v1081_v33, %v269_v9  ;;  %v1564_v46 = vpack.c.bf16 %v1550_v11, %v1546_v52 }
  0xd8   :  { %v349_v62 = vsub.f32 1.5, %v317_v43  ;;  %v1568_v57 = vpack.c.bf16 %v1553_v60, %v1560_v31  ;;  %v465_v10 = vunpack.c.l.bf16 %v1423_v27  ;;  %v1577_v63 = vmul.f32 %v380_v41, %v1306_v58 }
  0xd9   :  { %v1083_v3 = vpop.eup %1082  ;;  %v366_v6 = vsub.f32 1.5, %v334_v38  ;;  %v333_v4 = vmul.f32 %v1081_v33, %v301_v45  ;;  %v554_v19 = vsel %vm80_vm0, %v1564_v46, 0  ;;  %v255_v42 = vmul.f32 0.5, %v191_v18 }
  0xda   :  { %v288_v34 = vmul.f32 %v1083_v3, %v256_v51  ;;  %v272_v9 = vmul.f32 0.5, %v208_v24  ;;  %944 = vmatpush3.bf16.xpose.msra.mxu1 %v554_v19  ;;  %962 = vmatpush3.bf16.xpose.msra.mxu0 %v554_v19  ;;  %v466_v56 = vunpack.c.h.bf16 %v1423_v27  ;;  %v382_v59 = vmul.f32 %v1075_v22, %v350_v47 }
  0xdb   :  { %v398_v15 = vmul.f32 %v1079_v49, %v366_v6  ;;  %v1085_v55 = vpop.eup %1084  ;;  %v381_v40 = vmul.f32 %v1077_v14, %v349_v62  ;;  %v365_v53 = vsub.f32 1.5, %v333_v4  ;;  %1002 = vmatprep.subr.msk.bf16.mxu1 %vm80_vm0, %v1568_v57  ;;  %1010 = vmatprep.subr.msk.bf16.mxu0 %vm80_vm0, %v1568_v57  ;;  %v1585_v58 = vsub.f32 %v1413_v25, %v465_v10  ;;  %v1877_v10 = vld [vmem:[#allocation10_spill] sm:$0xff] }
  0xdc   :  { %v1087_v41 = vpop.eup %1086  ;;  %v320_v18 = vmul.f32 %v1083_v3, %v288_v34  ;;  %v287_v24 = vmul.f32 %v1085_v55, %v255_v42  ;;  %v271_v49 = vmul.f32 0.5, %v207_v5  ;;  %v1588_v1 = vsub.f32 %v1416_v48, %v466_v56 }
  0xdd   :  { %v1089_v27 = vpop.eup %1088  ;;  %v397_v22 = vmul.f32 %v1081_v33, %v365_v53  ;;  %v304_v14 = vmul.f32 %v1087_v41, %v272_v9  ;;  %v1592_v23 = vpack.c.bf16 %v1577_v63, %v1571_v44  ;;  %v1595_v43 = vmul.f32 %v398_v15, %v1354_v20 }
  0xde   :  { %v319_v38 = vmul.f32 %v1085_v55, %v287_v24  ;;  %v303_v25 = vmul.f32 %v1089_v27, %v271_v49  ;;  %v521_v51 = vpack.c.bf16 %v1588_v1, %v1585_v58  ;;  %v449_v5 = vunpack.c.l.bf16 %v1434_v61  ;;  %v1879_v24 = vld [vmem:[#allocation7_spill] sm:$0xff] }
  0xdf   :  { %v336_v47 = vmul.f32 %v1087_v41, %v304_v14  ;;  %v1601_v48 = vmul.f32 %v397_v22, %v1359_v21  ;;  %v1604_v33 = vmul.f32 %v381_v40, %v1343_v13  ;;  %v1607_v62 = vmul.f32 %v382_v59, %v1338_v12  ;;  %v1878_v12 = vld [vmem:[#allocation11_spill] sm:$0xff]  ;;  %v1880_v22 = vld [vmem:[#allocation8_spill] sm:$0xff] }
  0xe0   :  { %v352_v45 = vsub.f32 1.5, %v320_v18  ;;  %v335_v20 = vmul.f32 %v1089_v27, %v303_v25  ;;  %v450_v6 = vunpack.c.h.bf16 %v1434_v61  ;;  %v481_v4 = vsub.f32 %v1877_v10, %v449_v5  ;;  %v1881_v25 = vld [vmem:[#allocation6_spill] sm:$0xff] }
  0xe1   :  { %v351_v34 = vsub.f32 1.5, %v319_v38  ;;  %v368_v19 = vsub.f32 1.5, %v336_v47  ;;  %v557_v15 = vsel %vm80_vm0, %v1592_v23, 0  ;;  %v1615_v21 = vpack.c.bf16 %v1595_v43, %v1601_v48 }
  0xe2   :  { %v367_v13 = vsub.f32 1.5, %v335_v20  ;;  %946 = vmatpush3.bf16.xpose.msra.mxu1 %v557_v15  ;;  %964 = vmatpush3.bf16.xpose.msra.mxu0 %v557_v15  ;;  %v482_v42 = vsub.f32 %v1878_v12, %v450_v6  ;;  %v451_v61 = vunpack.c.l.bf16 %v1470_v32  ;;  %v452_v56 = vunpack.c.h.bf16 %v1470_v32  ;;  %v1883_v15 = vld [vmem:[#allocation14_spill] sm:$0xff]  ;;  %v1885_v12 = vld [vmem:[#allocation9_spill] sm:$0xff] }
  0xe3   :  { %v400_v9 = vmul.f32 %v1087_v41, %v368_v19  ;;  %1003 = vmatprep.subr.msk.bf16.mxu1 %vm80_vm0, %v1615_v21  ;;  %1011 = vmatprep.subr.msk.bf16.mxu0 %vm80_vm0, %v1615_v21  ;;  %v384_v59 = vmul.f32 %v1083_v3, %v352_v45  ;;  %v1626_v53 = vpack.c.bf16 %v1607_v62, %v1604_v33  ;;  %v453_v32 = vunpack.c.l.bf16 %v1499_v16 }
  0xe4   :  { %v399_v40 = vmul.f32 %v1089_v27, %v367_v13  ;;  %v513_v58 = vpack.c.bf16 %v482_v42, %v481_v4  ;;  %v383_v18 = vmul.f32 %v1085_v55, %v351_v34  ;;  %v483_v49 = vsub.f32 %v1459_v17, %v451_v61  ;;  %v1882_v17 = vld [vmem:[#allocation5_spill] sm:$0xff] }
  0xe5   :  { %v1629_v41 = vmul.f32 %v400_v9, %v1879_v24  ;;  %v484_v1 = vsub.f32 %v1462_v2, %v452_v56  ;;  %v454_v27 = vunpack.c.h.bf16 %v1499_v16  ;;  %v560_v55 = vsel %vm80_vm0, %v1626_v53, 0  ;;  %v1884_v13 = vld [vmem:[#allocation13_spill] sm:$0xff]  ;;  %v1887_v24 = vld [vmem:[#allocation15_spill] sm:$0xff] }
  0xe6   :  { %v1634_v14 = vmul.f32 %v399_v40, %v1880_v22  ;;  %v1645_v5 = vmul.f32 %v383_v18, %v1881_v25  ;;  %v1648_v2 = vmul.f32 %v384_v59, %v1882_v17  ;;  %v485_v47 = vsub.f32 %v1483_v29, %v453_v32  ;;  %v1886_v59 = vld [vmem:[#allocation12_spill] sm:$0xff] }
  0xe7   :  { %v514_v38 = vpack.c.bf16 %v484_v1, %v483_v49  ;;  %v486_v45 = vsub.f32 %v1491_v39, %v454_v27  ;;  %v455_v20 = vunpack.c.l.bf16 %v1526_v35  ;;  %v456_v6 = vunpack.c.h.bf16 %v1526_v35  ;;  %v1888_v1 = vld [vmem:[#allocation16_spill] sm:$0xff] }
  0xe8   :  { %v1639_v3 = vpack.c.bf16 %v1629_v41, %v1634_v14  ;;  %v1662_v29 = vpack.c.bf16 %v1648_v2, %v1645_v5  ;;  %v467_v35 = vunpack.c.l.bf16 %v1456_v50  ;;  %v468_v19 = vunpack.c.h.bf16 %v1456_v50 }
  0xe9   :  { %v515_v16 = vpack.c.bf16 %v486_v45, %v485_v47  ;;  %v487_v10 = vsub.f32 %v1514_v36, %v455_v20  ;;  %v488_v4 = vsub.f32 %v1518_v8, %v456_v6  ;;  %v684_v42 = vsel %vm80_vm0, %v513_v58, 0 }
  0xea   :  { %948 = vmatpush3.bf16.xpose.msra.mxu1 %v560_v55  ;;  %966 = vmatpush3.bf16.xpose.msra.mxu0 %v560_v55  ;;  %v563_v34 = vsel %vm80_vm0, %v1662_v29, 0  ;;  %v499_v36 = vsub.f32 %v1883_v15, %v467_v35  ;;  %v500_v8 = vsub.f32 %v1884_v13, %v468_v19  ;;  %v469_v61 = vunpack.c.l.bf16 %v1487_v28 }
  0xeb   :  { %1004 = vmatprep.subr.msk.bf16.mxu1 %vm80_vm0, %v1639_v3  ;;  %1012 = vmatprep.subr.msk.bf16.mxu0 %vm80_vm0, %v1639_v3  ;;  %v516_v39 = vpack.c.bf16 %v488_v4, %v487_v10  ;;  %v470_v56 = vunpack.c.h.bf16 %v1487_v28  ;;  %v687_v40 = vsel %vm80_vm0, %v514_v38, 0  ;;  %v471_v18 = vunpack.c.l.bf16 %v1522_v30 }
  0xec   :  { %v522_v9 = vpack.c.bf16 %v500_v8, %v499_v36  ;;  %v501_v50 = vsub.f32 %v1477_v37, %v469_v61  ;;  %v472_v28 = vunpack.c.h.bf16 %v1522_v30  ;;  %v690_v32 = vsel %vm80_vm0, %v515_v16, 0 }
  0xed   :  { %v503_v49 = vsub.f32 %v1887_v24, %v471_v18  ;;  %v473_v37 = vunpack.c.l.bf16 %v1542_v54  ;;  %v457_v38 = vunpack.c.l.bf16 %v1564_v46  ;;  %v458_v25 = vunpack.c.h.bf16 %v1564_v46 }
  0xee   :  { %v504_v22 = vsub.f32 %v1888_v1, %v472_v28  ;;  %v475_v47 = vunpack.c.l.bf16 %v1568_v57  ;;  %v693_v45 = vsel %vm80_vm0, %v516_v39, 0  ;;  %v476_v6 = vunpack.c.h.bf16 %v1568_v57 }
  0xef   :  { %v505_v30 = vsub.f32 %v1535_v0, %v473_v37  ;;  %v489_v17 = vsub.f32 %v1546_v52, %v457_v38  ;;  %v459_v0 = vunpack.c.l.bf16 %v1592_v23  ;;  %v460_v52 = vunpack.c.h.bf16 %v1592_v23 }
  0xf0   :  { %v524_v27 = vpack.c.bf16 %v504_v22, %v503_v49  ;;  %v508_v46 = vsub.f32 %v1553_v60, %v476_v6  ;;  %v477_v4 = vunpack.c.l.bf16 %v1615_v21  ;;  %v479_v15 = vunpack.c.l.bf16 %v1639_v3 }
  0xf1   :  { %v491_v10 = vsub.f32 %v1571_v44, %v459_v0  ;;  %v492_v57 = vsub.f32 %v1577_v63, %v460_v52  ;;  %v462_v44 = vunpack.c.h.bf16 %v1626_v53  ;;  %v480_v13 = vunpack.c.h.bf16 %v1639_v3 }
  0xf2   :  { %950 = vmatpush3.bf16.xpose.msra.mxu1 %v563_v34  ;;  %968 = vmatpush3.bf16.xpose.msra.mxu0 %v563_v34  ;;  %v478_v34 = vunpack.c.h.bf16 %v1615_v21  ;;  %v509_v60 = vsub.f32 %v1601_v48, %v477_v4  ;;  %v511_v48 = vsub.f32 %v1634_v14, %v479_v15 }
  0xf3   :  { %1013 = vmatprep.subr.msk.bf16.mxu0 %vm80_vm0, %v521_v51  ;;  %v502_v51 = vsub.f32 %v1480_v26, %v470_v56  ;;  %v474_v26 = vunpack.c.h.bf16 %v1542_v54  ;;  %v490_v54 = vsub.f32 %v1550_v11, %v458_v25  ;;  %v518_v35 = vpack.c.bf16 %v492_v57, %v491_v10 }
  0xf4   :  { %v510_v23 = vsub.f32 %v1595_v43, %v478_v34  ;;  %v494_v21 = vsub.f32 %v1607_v62, %v462_v44  ;;  %v512_v43 = vsub.f32 %v1629_v41, %v480_v13 }
  0xf5   :  { %v523_v58 = vpack.c.bf16 %v502_v51, %v501_v50  ;;  %v506_v55 = vsub.f32 %v1538_v7, %v474_v26  ;;  %v517_v16 = vpack.c.bf16 %v490_v54, %v489_v17  ;;  %v507_v7 = vsub.f32 %v1560_v31, %v475_v47 }
  0xf6   :  { %v461_v31 = vunpack.c.l.bf16 %v1626_v53  ;;  %v699_v63 = vsel %vm80_vm0, %v518_v35, 0  ;;  %v527_v36 = vpack.c.bf16 %v510_v23, %v509_v60  ;;  %v463_v53 = vunpack.c.l.bf16 %v1662_v29 }
  0xf7   :  { %v525_v20 = vpack.c.bf16 %v506_v55, %v505_v30  ;;  %v696_v11 = vsel %vm80_vm0, %v517_v16, 0  ;;  %v526_v39 = vpack.c.bf16 %v508_v46, %v507_v7 }
  0xf8   :  { %v493_v19 = vsub.f32 %v1604_v33, %v461_v31  ;;  %v464_v33 = vunpack.c.h.bf16 %v1662_v29  ;;  %v495_v61 = vsub.f32 %v1645_v5, %v463_v53 }
  0xf9   :  { %970 = vmatmul.mubr.msk.bf16.vlgmr.msra.gmra.mrb[0].mxu0 %vm80_vm0, %v1885_v12  ;;  %952 = vmatmul.mubr.msk.bf16.vlgmr.msra.gmra.mrb[0].mxu1 %vm80_vm0, %v1886_v59 }
  0xfa   :  { %972 = vmatpush3.bf16.xpose.msra.mxu0 %v684_v42  ;;  %987 = vmatprep.mubr.msk.bf16.mxu0 %vm80_vm0, %v1885_v12  ;;  %v519_v8 = vpack.c.bf16 %v494_v21, %v493_v19  ;;  %v496_v62 = vsub.f32 %v1648_v2, %v464_v33 }
  0xfb   :  { %1014 = vmatprep.subr.msk.bf16.mxu0 %vm80_vm0, %v522_v9  ;;  %v528_v9 = vpack.c.bf16 %v512_v43, %v511_v48 }
  0xfc   :  { %v702_v42 = vsel %vm80_vm0, %v519_v8, 0  ;;  %v520_v3 = vpack.c.bf16 %v496_v62, %v495_v61 }
  0xfe   :  { %v705_v14 = vsel %vm80_vm0, %v520_v3, 0 }
 0x102   :  { %974 = vmatpush3.bf16.xpose.msra.mxu0 %v687_v40 }
 0x103   :  { %1015 = vmatprep.subr.msk.bf16.mxu0 %vm80_vm0, %v523_v58 }
 0x10a   :  { %976 = vmatpush3.bf16.xpose.msra.mxu0 %v690_v32 }
 0x10b   :  { %1016 = vmatprep.subr.msk.bf16.mxu0 %vm80_vm0, %v524_v27 }
 0x112   :  { %978 = vmatpush3.bf16.xpose.msra.mxu0 %v693_v45 }
 0x113   :  { %1017 = vmatprep.subr.msk.bf16.mxu0 %vm80_vm0, %v525_v20 }
 0x11a   :  { %980 = vmatpush3.bf16.xpose.msra.mxu0 %v696_v11 }
 0x11b   :  { %1018 = vmatprep.subr.msk.bf16.mxu0 %vm80_vm0, %v526_v39 }
 0x122   :  { %982 = vmatpush3.bf16.xpose.msra.mxu0 %v699_v63 }
 0x123   :  { %1019 = vmatprep.subr.msk.bf16.mxu0 %vm80_vm0, %v527_v36 }
 0x12a   :  { %984 = vmatpush3.bf16.xpose.msra.mxu0 %v702_v42 }
 0x12b   :  { %1020 = vmatprep.subr.msk.bf16.mxu0 %vm80_vm0, %v528_v9 }
 0x132   :  { %986 = vmatpush3.bf16.xpose.msra.mxu0 %v705_v14 }
 0x139   :  { %988 = vmatmul.mubr.msk.bf16.vlgmr.msra.gmra.mrb[0].mxu0 %vm80_vm0, %v1885_v12 }
 0x1cc   :  { %v623_v41 = vpop.f32.mrb[0].mxu1 }
 0x1cd   :  { %v625_v56 = vpop.f32.mrb[1].mxu1 }
 0x1ce   :  { %v627_v29 = vpop.f32.mrb[2].mxu1 }
 0x1cf   :  { %v629_v59 = vpop.f32.mrb[3].mxu1 }
 0x20c   :  { %v765_v50 = vpop.f32.mrb[0].mxu0 }
 0x20d   :  { %v1734_v51 = vadd.f32 %v765_v50, %v623_v41  ;;  %v767_v5 = vpop.f32.mrb[1].mxu0 }
 0x20e   :  { %v1736_v40 = vadd.f32 %v767_v5, %v625_v56  ;;  %v769_v2 = vpop.f32.mrb[2].mxu0 }
 0x20f   :  { %v931_v58 = vclamps-f32 %v1734_v51, 0.9999999  ;;  %v1739_v18 = vadd.f32 %v769_v2, %v627_v29  ;;  %v771_v28 = vpop.f32.mrb[3].mxu0 }
 0x210   :  { %v932_v24 = vclamps-f32 %v1736_v40, 0.9999999  ;;  %v1742_v49 = vadd.f32 %v771_v28, %v629_v59 }
 0x211   :  { %v1746_v12 = vand.u32 2147483647, %v931_v58  ;;  %v933_v1 = vclamps-f32 %v1739_v18, 0.9999999  ;;  %vm886_vm6 = vcmp.lt.f32.partialorder %v931_v58, 0.0 }
 0x212   :  { %v1751_v22 = vand.u32 2147483647, %v932_v24  ;;  %v934_v32 = vclamps-f32 %v1742_v49, 0.9999999  ;;  %vm887_vm9 = vcmp.lt.f32.partialorder %v932_v24, 0.0 }
 0x213   :  { %v790_v27 = vmul.f32 -0.0012624911, %v1746_v12  ;;  %v846_v37 = vsub.f32 1.0, %v1746_v12  ;;  %v1758_v26 = vand.u32 2147483647, %v933_v1  ;;  %vm888_vm11 = vcmp.lt.f32.partialorder %v933_v1, 0.0 }
 0x214   :  { %v791_v38 = vmul.f32 -0.0012624911, %v1751_v22  ;;  %v847_v30 = vsub.f32 1.0, %v1751_v22  ;;  %v1764_v55 = vand.u32 2147483647, %v934_v32  ;;  %vm889_vm12 = vcmp.lt.f32.partialorder %v934_v32, 0.0 }
 0x215   :  { %v794_v25 = vadd.f32 0.00667009, %v790_v27  ;;  %v792_v17 = vmul.f32 -0.0012624911, %v1758_v26  ;;  %v1767_v47 = vmax.f32 %v846_v37, 0.0  ;;  %v848_v20 = vsub.f32 1.0, %v1758_v26 }
 0x216   :  { %v795_v45 = vadd.f32 0.00667009, %v791_v38  ;;  %v793_v54 = vmul.f32 -0.0012624911, %v1764_v55  ;;  %v1772_v0 = vmax.f32 %v847_v30, 0.0  ;;  %v849_v52 = vsub.f32 1.0, %v1764_v55 }
 0x217   :  { %v798_v6 = vmul.f32 %v794_v25, %v1746_v12  ;;  %v796_v46 = vadd.f32 0.00667009, %v792_v17  ;;  %1090 = vrsqrt.f32 %v1767_v47  ;;  %v1777_v4 = vmax.f32 %v848_v20, 0.0 }
 0x218   :  { %v799_v16 = vmul.f32 %v795_v45, %v1751_v22  ;;  %v797_v11 = vadd.f32 0.00667009, %v793_v54  ;;  %1092 = vrsqrt.f32 %v1772_v0  ;;  %v1784_v23 = vmax.f32 %v849_v52, 0.0 }
 0x219   :  { %v802_v7 = vadd.f32 -0.017088126, %v798_v6  ;;  %v800_v57 = vmul.f32 %v796_v46, %v1758_v26  ;;  %1094 = vrsqrt.f32 %v1777_v4  ;;  %vm856_vm1 = vcmp.eq.f32.partialorder %v1767_v47, inf }
 0x21a   :  { %v803_v10 = vadd.f32 -0.017088126, %v799_v16  ;;  %v801_v60 = vmul.f32 %v797_v11, %v1764_v55  ;;  %1096 = vrsqrt.f32 %v1784_v23  ;;  %vm858_vm2 = vcmp.eq.f32.partialorder %v1767_v47, 0.0 }
 0x21b   :  { %v806_v39 = vmul.f32 %v802_v7, %v1746_v12  ;;  %v804_v35 = vadd.f32 -0.017088126, %v800_v57  ;;  %v859_v38 = vand.u32 2147483648, %v1767_v47  ;;  %vm863_vm3 = vcmp.eq.f32.partialorder %v1772_v0, inf }
 0x21c   :  { %v807_v34 = vmul.f32 %v803_v10, %v1751_v22  ;;  %v805_v63 = vadd.f32 -0.017088126, %v801_v60  ;;  %vm865_vm4 = vcmp.eq.f32.partialorder %v1772_v0, 0.0  ;;  %v866_v10 = vand.u32 2147483648, %v1772_v0 }
 0x21d   :  { %v810_v31 = vadd.f32 0.03089188, %v806_v39  ;;  %v808_v15 = vmul.f32 %v804_v35, %v1758_v26  ;;  %vm870_vm5 = vcmp.eq.f32.partialorder %v1777_v4, inf  ;;  %vm872_vm7 = vcmp.eq.f32.partialorder %v1777_v4, 0.0 }
 0x21e   :  { %v811_v44 = vadd.f32 0.03089188, %v807_v34  ;;  %v809_v48 = vmul.f32 %v805_v63, %v1764_v55  ;;  %vm877_vm8 = vcmp.eq.f32.partialorder %v1784_v23, inf  ;;  %v880_v58 = vand.u32 2147483648, %v1784_v23 }
 0x21f   :  { %v814_v19 = vmul.f32 %v810_v31, %v1746_v12  ;;  %v812_v13 = vadd.f32 0.03089188, %v808_v15  ;;  %vm879_vm10 = vcmp.eq.f32.partialorder %v1784_v23, 0.0 }
 0x220   :  { %v815_v36 = vmul.f32 %v811_v44, %v1751_v22  ;;  %v813_v33 = vadd.f32 0.03089188, %v809_v48  ;;  %v873_v44 = vand.u32 2147483648, %v1777_v4 }
 0x221   :  { %v818_v21 = vadd.f32 -0.050174303, %v814_v19  ;;  %v816_v53 = vmul.f32 %v812_v13, %v1758_v26  ;;  %v1091_v42 = vpop.eup %1090 }
 0x222   :  { %v819_v8 = vadd.f32 -0.050174303, %v815_v36  ;;  %v1093_v61 = vpop.eup %1092  ;;  %v817_v41 = vmul.f32 %v813_v33, %v1764_v55  ;;  %v855_v29 = vmul.f32 %v1091_v42, %v1767_v47 }
 0x223   :  { %v822_v43 = vmul.f32 %v818_v21, %v1746_v12  ;;  %v820_v3 = vadd.f32 -0.050174303, %v816_v53  ;;  %v1095_v50 = vpop.eup %1094  ;;  %v862_v2 = vmul.f32 %v1093_v61, %v1772_v0 }
 0x224   :  { %v823_v9 = vmul.f32 %v819_v8, %v1751_v22  ;;  %v821_v28 = vadd.f32 -0.050174303, %v817_v41  ;;  %v1097_v17 = vpop.eup %1096  ;;  %v857_v20 = vsel %vm856_vm1, %v1767_v47, %v855_v29  ;;  %v869_v6 = vmul.f32 %v1095_v50, %v1777_v4 }
 0x225   :  { %v826_v62 = vadd.f32 0.08897899, %v822_v43  ;;  %v824_v59 = vmul.f32 %v820_v3, %v1758_v26  ;;  %v864_v7 = vsel %vm863_vm3, %v1772_v0, %v862_v2  ;;  %v876_v34 = vmul.f32 %v1097_v17, %v1784_v23 }
 0x226   :  { %v827_v14 = vadd.f32 0.08897899, %v823_v9  ;;  %v825_v25 = vmul.f32 %v821_v28, %v1764_v55  ;;  %v867_v31 = vsel %vm865_vm4, %v866_v10, %v864_v7  ;;  %v871_v60 = vsel %vm870_vm5, %v1777_v4, %v869_v6 }
 0x227   :  { %v830_v56 = vmul.f32 %v826_v62, %v1746_v12  ;;  %v828_v37 = vadd.f32 0.08897899, %v824_v59  ;;  %v874_v36 = vsel %vm872_vm7, %v873_v44, %v871_v60 }
 0x228   :  { %v831_v5 = vmul.f32 %v827_v14, %v1751_v22  ;;  %v829_v46 = vadd.f32 0.08897899, %v825_v25 }
 0x229   :  { %v834_v27 = vadd.f32 -0.2145988, %v830_v56  ;;  %v832_v54 = vmul.f32 %v828_v37, %v1758_v26 }
 0x22a   :  { %v835_v30 = vadd.f32 -0.2145988, %v831_v5  ;;  %v833_v57 = vmul.f32 %v829_v46, %v1764_v55 }
 0x22b   :  { %v838_v45 = vmul.f32 %v834_v27, %v1746_v12  ;;  %v836_v11 = vadd.f32 -0.2145988, %v832_v54  ;;  %v860_v12 = vsel %vm858_vm2, %v859_v38, %v857_v20 }
 0x22c   :  { %v839_v16 = vmul.f32 %v835_v30, %v1751_v22  ;;  %v837_v19 = vadd.f32 -0.2145988, %v833_v57 }
 0x22d   :  { %v842_v52 = vadd.f32 1.5707963, %v838_v45  ;;  %v840_v35 = vmul.f32 %v836_v11, %v1758_v26  ;;  %v878_v26 = vsel %vm877_vm8, %v1784_v23, %v876_v34 }
 0x22e   :  { %v843_v39 = vadd.f32 1.5707963, %v839_v16  ;;  %v841_v21 = vmul.f32 %v837_v19, %v1764_v55  ;;  %v881_v33 = vsel %vm879_vm10, %v880_v58, %v878_v26 }
 0x22f   :  { %v882_v22 = vmul.f32 %v860_v12, %v842_v52  ;;  %v844_v15 = vadd.f32 1.5707963, %v840_v35 }
 0x230   :  { %v883_v0 = vmul.f32 %v867_v31, %v843_v39  ;;  %v845_v43 = vadd.f32 1.5707963, %v841_v21 }
 0x231   :  { %v890_v47 = vsub.f32 3.1415927, %v882_v22  ;;  %v884_v51 = vmul.f32 %v874_v36, %v844_v15 }
 0x232   :  { %v891_v63 = vsub.f32 3.1415927, %v883_v0  ;;  %v885_v55 = vmul.f32 %v881_v33, %v845_v43 }
 0x233   :  { %v894_v13 = vsel %vm886_vm6, %v890_v47, %v882_v22  ;;  %v892_v53 = vsub.f32 3.1415927, %v884_v51 }
 0x234   :  { %v898_v48 = vmul.f32 40.743664, %v894_v13  ;;  %v895_v8 = vsel %vm887_vm9, %v891_v63, %v883_v0  ;;  %v893_v24 = vsub.f32 3.1415927, %v885_v55 }
 0x235   :  { %v899_v4 = vmul.f32 40.743664, %v895_v8  ;;  %v896_v61 = vsel %vm888_vm11, %v892_v53, %v884_v51 }
 0x236   :  { %v902_v42 = vsub.f32 64.0, %v898_v48  ;;  %v900_v40 = vmul.f32 40.743664, %v896_v61  ;;  %v897_v3 = vsel %vm889_vm12, %v893_v24, %v885_v55 }
 0x237   :  { %v903_v9 = vsub.f32 64.0, %v899_v4  ;;  %v901_v23 = vmul.f32 40.743664, %v897_v3 }
 0x238   :  { %906 = vst [vmem:[#allocation2] sm:$0xff] %v902_v42  ;;  %v904_v62 = vsub.f32 64.0, %v900_v40 }
 0x239   :  { %907 = vst [vmem:[#allocation2 + $0x8] sm:$0xff] %v903_v9  ;;  %v905_v14 = vsub.f32 64.0, %v901_v23 }
 0x23a   :  { %908 = vst [vmem:[#allocation2 + $0x10] sm:$0xff] %v904_v62 }
 0x23b   :  { %909 = vst [vmem:[#allocation2 + $0x18] sm:$0xff] %v905_v14 }
 0x23c   :  { %1109 = shalt.err (!%p1106_p4)
}
 0x23d   :  { %s1110_s28 = scalar_lea.hbm %s1851_s3, 512 }
 0x23e   :  { %p1111_p5 = scmp.ne.s32.totalorder %s1851_s3, %s1110_s28  ;;  %p1114_p6 = scmp.lt.u32.totalorder %s1110_s28, %s1851_s3 }
 0x240   :  { %p1116_p7 = pnand %p1114_p6, %p1111_p5 }
 0x242   :  { %1119 = shalt.err (!%p1116_p7)
}
 0x243   :  { %s1123_s6 = smov 256   ;;  %s1124_s7 = smov 16  }
 0x244   :  { %921 = dma.vmem_to_hbm [thread:$0]  %s916_s24, 512, %s1851_s3, [#allocation3], %s1123_s6, %s1123_s6, %s1124_s7  }
 0x245   :  { %1120 = dma.done.wait [#allocation3], 512  }
 0x246   :  { %1121 = vsyncadd [#allocation3], 4294966784 }
 0x247   :  { %925 = vsyncpa [#allocation3], 1 }

</bundles_post_ra>
